<compile_context>
chip_gen: v7x
topology: tpu7x:2x2x1
jax: 0.10.0
libtpu: 0.0.40
codegen_flags: <defaults>
</compile_context>

<pallas_src>
import jax
import jax.numpy as jnp
from jax.experimental import pallas as pl
from jax.experimental.pallas import tpu as pltpu


def _scoring_kernel(h_ref, r_ref, t_ref, w1_ref, w2_ref, b_ref, o_ref):
    # h/r/t_ref : (TB, D)  batch tiles of the three embeddings
    # w1/w2_ref : (3, D)   rows = [h, r, t] slices of the (3D, 1) weight columns
    # b_ref     : (1,)     SMEM scalar, = b1 + b2
    # o_ref     : (1, TB)  lane-dense output row for this batch tile
    f32 = jnp.float32
    h = h_ref[...].astype(f32)
    r = r_ref[...].astype(f32)
    t = t_ref[...].astype(f32)
    w1 = w1_ref[...].astype(f32)
    w2 = w2_ref[...].astype(f32)

    # Fused VPU path: x*(x*w1 + w2) per entity, summed elementwise, then one
    # lane reduce.  No MXU, no materialized x**2 tile.
    p = (h * (h * w1[0:1, :] + w2[0:1, :])
         + r * (r * w1[1:2, :] + w2[1:2, :])
         + t * (t * w1[2:3, :] + w2[2:3, :]))           # (TB, D)
    y = jnp.sum(p, axis=-1) + b_ref[0]                  # (TB,)
    o_ref[...] = y.reshape(o_ref.shape).astype(o_ref.dtype)


def _pick_tile_b(B, requested=None):
    """Batch tile: multiple grid steps for large B, VMEM-safe on all gens."""
    if requested is not None:
        assert B % requested == 0, "tile_b must divide B"
        assert requested == B or (requested % 128 == 0), \
            "tile_b must be a multiple of 128 (lane-dense output) or equal B"
        return requested
    max_tile = 512  # 2x double-buffered (tile_b, D) f32 inputs stay well under scoped VMEM
    if B <= max_tile:
        return B
    # Largest multiple of 128 (lane-dense output blocks) that divides B.
    for tb in range(max_tile, 0, -128):
        if B % tb == 0:
            return tb
    return B  # fallback: single tile for awkward batch sizes


def polynomial_scoring(h, r, t, w1, b1, w2, b2, *, tile_b=None):
    """h, r, t: (B, D). w1, w2: (3*D, 1). b1, b2: (1, 1). Returns (B, 1)."""
    B, D = h.shape
    assert r.shape == (B, D) and t.shape == (B, D)
    F = 3 * D
    assert w1.shape == (F, 1) and w2.shape == (F, 1)

    # Tiny parameter re-layout in the wrapper (D elements each, negligible):
    # rows 0/1/2 of (3, D) are the h/r/t slices of the (3D, 1) weight column.
    w1s = w1.reshape(3, D)
    w2s = w2.reshape(3, D)
    # Hoist the bias: single scalar b1 + b2, kept in SMEM inside the kernel.
    b = (jnp.reshape(b1, ()) + jnp.reshape(b2, ())).astype(jnp.float32).reshape(1)

    tile_b = _pick_tile_b(B, tile_b)
    grid = (B // tile_b,)

    out = pl.pallas_call(
        _scoring_kernel,
        out_shape=jax.ShapeDtypeStruct((1, B), h.dtype),
        grid_spec=pltpu.PrefetchScalarGridSpec(
            num_scalar_prefetch=0,
            grid=grid,
            in_specs=[
                pl.BlockSpec((tile_b, D), lambda i: (i, 0)),   # h tile
                pl.BlockSpec((tile_b, D), lambda i: (i, 0)),   # r tile
                pl.BlockSpec((tile_b, D), lambda i: (i, 0)),   # t tile
                pl.BlockSpec((3, D), lambda i: (0, 0)),        # w1 rows (full)
                pl.BlockSpec((3, D), lambda i: (0, 0)),        # w2 rows (full)
                pl.BlockSpec(memory_space=pltpu.MemorySpace.SMEM),  # bias scalar
            ],
            # Lane-dense output: one (1, tile_b) row per grid step.
            out_specs=pl.BlockSpec((1, tile_b), lambda i: (0, i)),
        ),
        compiler_params=pltpu.CompilerParams(
            dimension_semantics=("parallel",),
        ),
    )(h, r, t, w1s, w2s, b)
    # (1, B) -> (B, 1): pure row-major reshape, no data movement.
    return out.reshape(B, 1)


def reference(h, r, t, w1, b1, w2, b2):
    x = jnp.concatenate([h, r, t], axis=1)
    return (x * x) @ w1 + x @ w2 + b1[0, 0] + b2[0, 0]


if __name__ == "__main__":
    # Small shapes: batch=8, per-entity embedding dim D=32 -> input_dim = 96.
    B, D = 8, 32
    F = 3 * D  # input_dim of the Linear layers

    key = jax.random.PRNGKey(0)
    kh, kr, kt, kw1, kb1, kw2, kb2, k2 = jax.random.split(key, 8)

    h = jax.random.normal(kh, (B, D), dtype=jnp.float32)
    r = jax.random.normal(kr, (B, D), dtype=jnp.float32)
    t = jax.random.normal(kt, (B, D), dtype=jnp.float32)

    # Deterministic parameter init mimicking nn.Linear's U(-1/sqrt(F), 1/sqrt(F)).
    bound = 1.0 / jnp.sqrt(jnp.float32(F))
    w1 = jax.random.uniform(kw1, (F, 1), jnp.float32, -bound, bound)
    b1 = jax.random.uniform(kb1, (1, 1), jnp.float32, -bound, bound)
    w2 = jax.random.uniform(kw2, (F, 1), jnp.float32, -bound, bound)
    b2 = jax.random.uniform(kb2, (1, 1), jnp.float32, -bound, bound)

    out = polynomial_scoring(h, r, t, w1, b1, w2, b2)
    out = jax.block_until_ready(out)
    ref = reference(h, r, t, w1, b1, w2, b2)
    assert out.shape == (B, 1), out.shape
    assert jnp.allclose(out, ref, atol=1e-5, rtol=1e-5), (out, ref)

    # Larger batch: exercises the multi-tile grid path (tile_b=512, grid=(2,),
    # megacore-shardable on v7x) and multi-block lane-dense output stores.
    B2 = 1024
    k2h, k2r, k2t = jax.random.split(k2, 3)
    h2 = jax.random.normal(k2h, (B2, D), dtype=jnp.float32)
    r2 = jax.random.normal(k2r, (B2, D), dtype=jnp.float32)
    t2 = jax.random.normal(k2t, (B2, D), dtype=jnp.float32)
    out2 = polynomial_scoring(h2, r2, t2, w1, b1, w2, b2)
    out2 = jax.block_until_ready(out2)
    ref2 = reference(h2, r2, t2, w1, b1, w2, b2)
    assert out2.shape == (B2, 1), out2.shape
    assert jnp.allclose(out2, ref2, atol=1e-4, rtol=1e-4)

    print("KERNEL_OK")
</pallas_src>

<mosaic_0001>
module attributes {stable_mosaic.version = 11 : i64} {
  func.func @_scoring_kernel(%arg0: i32, %arg1: memref<8x32xf32, #tpu.memory_space<vmem>>, %arg2: memref<8x32xf32, #tpu.memory_space<vmem>>, %arg3: memref<8x32xf32, #tpu.memory_space<vmem>>, %arg4: memref<3x32xf32, #tpu.memory_space<vmem>>, %arg5: memref<3x32xf32, #tpu.memory_space<vmem>>, %arg6: memref<1xf32, #tpu.memory_space<smem>>, %arg7: memref<1x8xf32, #tpu.memory_space<vmem>>) attributes {dimension_semantics = [#tpu.dimension_semantics<parallel>], iteration_bounds = array<i64: 1>, scalar_prefetch = 0 : i64, scratch_operands = 0 : i64, tpu.core_type = #tpu.core_type<tc>, window_params = [{transform_indices = @transform_0, window_bounds = array<i64: 8, 32>}, {transform_indices = @transform_1, window_bounds = array<i64: 8, 32>}, {transform_indices = @transform_2, window_bounds = array<i64: 8, 32>}, {pipeline_mode = #tpu.pipeline_mode<synchronous>, transform_indices = @transform_3, window_bounds = array<i64: 3, 32>}, {pipeline_mode = #tpu.pipeline_mode<synchronous>, transform_indices = @transform_4, window_bounds = array<i64: 3, 32>}, {transform_indices = @transform_5, window_bounds = array<i64: 1>}, {transform_indices = @transform_6, window_bounds = array<i64: 1, 8>}]} {
    %c0 = arith.constant 0 : index
    %c0_0 = arith.constant 0 : index
    %0 = vector.load %arg1[%c0, %c0_0] : memref<8x32xf32, #tpu.memory_space<vmem>>, vector<8x32xf32>
    %c0_1 = arith.constant 0 : index
    %c0_2 = arith.constant 0 : index
    %1 = vector.load %arg2[%c0_1, %c0_2] : memref<8x32xf32, #tpu.memory_space<vmem>>, vector<8x32xf32>
    %c0_3 = arith.constant 0 : index
    %c0_4 = arith.constant 0 : index
    %2 = vector.load %arg3[%c0_3, %c0_4] : memref<8x32xf32, #tpu.memory_space<vmem>>, vector<8x32xf32>
    %c0_5 = arith.constant 0 : index
    %c0_6 = arith.constant 0 : index
    %3 = vector.load %arg4[%c0_5, %c0_6] : memref<3x32xf32, #tpu.memory_space<vmem>>, vector<3x32xf32>
    %c0_7 = arith.constant 0 : index
    %c0_8 = arith.constant 0 : index
    %4 = vector.load %arg5[%c0_7, %c0_8] : memref<3x32xf32, #tpu.memory_space<vmem>>, vector<3x32xf32>
    %5 = vector.extract_strided_slice %3 {offsets = [0, 0], sizes = [1, 32], strides = [1, 1]} : vector<3x32xf32> to vector<1x32xf32>
    %6 = vector.broadcast %5 : vector<1x32xf32> to vector<8x32xf32>
    %7 = arith.mulf %0, %6 : vector<8x32xf32>
    %8 = vector.extract_strided_slice %4 {offsets = [0, 0], sizes = [1, 32], strides = [1, 1]} : vector<3x32xf32> to vector<1x32xf32>
    %9 = vector.broadcast %8 : vector<1x32xf32> to vector<8x32xf32>
    %10 = arith.addf %7, %9 : vector<8x32xf32>
    %11 = arith.mulf %0, %10 : vector<8x32xf32>
    %12 = vector.extract_strided_slice %3 {offsets = [1, 0], sizes = [1, 32], strides = [1, 1]} : vector<3x32xf32> to vector<1x32xf32>
    %13 = vector.broadcast %12 : vector<1x32xf32> to vector<8x32xf32>
    %14 = arith.mulf %1, %13 : vector<8x32xf32>
    %15 = vector.extract_strided_slice %4 {offsets = [1, 0], sizes = [1, 32], strides = [1, 1]} : vector<3x32xf32> to vector<1x32xf32>
    %16 = vector.broadcast %15 : vector<1x32xf32> to vector<8x32xf32>
    %17 = arith.addf %14, %16 : vector<8x32xf32>
    %18 = arith.mulf %1, %17 : vector<8x32xf32>
    %19 = arith.addf %11, %18 : vector<8x32xf32>
    %20 = vector.extract_strided_slice %3 {offsets = [2, 0], sizes = [1, 32], strides = [1, 1]} : vector<3x32xf32> to vector<1x32xf32>
    %21 = vector.broadcast %20 : vector<1x32xf32> to vector<8x32xf32>
    %22 = arith.mulf %2, %21 : vector<8x32xf32>
    %23 = vector.extract_strided_slice %4 {offsets = [2, 0], sizes = [1, 32], strides = [1, 1]} : vector<3x32xf32> to vector<1x32xf32>
    %24 = vector.broadcast %23 : vector<1x32xf32> to vector<8x32xf32>
    %25 = arith.addf %22, %24 : vector<8x32xf32>
    %26 = arith.mulf %2, %25 : vector<8x32xf32>
    %27 = arith.addf %19, %26 : vector<8x32xf32>
    %cst = arith.constant dense<0.000000e+00> : vector<8xf32>
    %28 = vector.multi_reduction <add>, %27, %cst [1] : vector<8x32xf32> to vector<8xf32>
    %c0_9 = arith.constant 0 : index
    %29 = memref.load %arg6[%c0_9] : memref<1xf32, #tpu.memory_space<smem>>
    %30 = vector.broadcast %29 : f32 to vector<8xf32>
    %31 = arith.addf %28, %30 : vector<8xf32>
    %32 = vector.shape_cast %31 : vector<8xf32> to vector<1x8xf32>
    %c0_10 = arith.constant 0 : index
    %c0_11 = arith.constant 0 : index
    %33 = vector.load %arg7[%c0_10, %c0_11] : memref<1x8xf32, #tpu.memory_space<vmem>>, vector<1x8xf32>
    tpu.vector_store %arg7[%c0_10, %c0_11], %32 {strides = array<i32>} : memref<1x8xf32, #tpu.memory_space<vmem>>, vector<1x8xf32>,
    return
  }
  func.func @transform_0(%arg0: i32) -> (i32, i32) {
    %c0_i32 = arith.constant 0 : i32
    %c0_i32_0 = arith.constant 0 : i32
    return %arg0, %c0_i32 : i32, i32
  }
  func.func @transform_1(%arg0: i32) -> (i32, i32) {
    %c0_i32 = arith.constant 0 : i32
    %c0_i32_0 = arith.constant 0 : i32
    return %arg0, %c0_i32 : i32, i32
  }
  func.func @transform_2(%arg0: i32) -> (i32, i32) {
    %c0_i32 = arith.constant 0 : i32
    %c0_i32_0 = arith.constant 0 : i32
    return %arg0, %c0_i32 : i32, i32
  }
  func.func @transform_3(%arg0: i32) -> (i32, i32) {
    %c0_i32 = arith.constant 0 : i32
    %c0_i32_0 = arith.constant 0 : i32
    %c0_i32_1 = arith.constant 0 : i32
    return %c0_i32, %c0_i32_0 : i32, i32
  }
  func.func @transform_4(%arg0: i32) -> (i32, i32) {
    %c0_i32 = arith.constant 0 : i32
    %c0_i32_0 = arith.constant 0 : i32
    %c0_i32_1 = arith.constant 0 : i32
    return %c0_i32, %c0_i32_0 : i32, i32
  }
  func.func @transform_5(%arg0: i32) -> i32 {
    %c0_i32 = arith.constant 0 : i32
    %c0_i32_0 = arith.constant 0 : i32
    return %c0_i32 : i32
  }
  func.func @transform_6(%arg0: i32) -> (i32, i32) {
    %c0_i32 = arith.constant 0 : i32
    %c0_i32_0 = arith.constant 0 : i32
    return %c0_i32, %arg0 : i32, i32
  }
}

</mosaic_0001>

<bundles_post_ra>
// kernel: tpu_custom_call.1
= control target key start
LH: loop header
LB: loop body
LE: loop exit
PB: predicated region body
PF: predicated region fallthrough
CT: control target
= control target key end

     0   :  { %12 = vsyncpa [#allocation4], 0  ;;  %s283_s0 = inlined_call_operand.hbm [shape: f32[8,32], index: 0, kind: input, shape index: {}]   ;;  %s284_s1 = inlined_call_operand.hbm [shape: f32[8,32], index: 1, kind: input, shape index: {}]   ;;  %s285_s2 = inlined_call_operand.vmem [shape: f32[8,32], index: 2, kind: input, shape index: {}]   ;;  %s286_s3 = inlined_call_operand.vmem [shape: f32[3,32], index: 3, kind: input, shape index: {}]   ;;  %s287_s4 = inlined_call_operand.vmem [shape: f32[3,32], index: 4, kind: input, shape index: {}]   ;;  %s288_s5 = inlined_call_operand.<no memory space> [shape: f32[1], index: 5, kind: input, shape index: {}]   ;;  %s289_s6 = inlined_call_operand.hbm [shape: f32[1,8], index: 6, kind: output, shape index: {}]  }
   0x1   :  { %13 = vsyncpa [#allocation7], 0 }
   0x2   :  { %14 = vsyncpa [#allocation5], 0  ;;  %s197_s21 = smov [#allocation3]   ;;  %s198_s23 = smov [#allocation6]  }
   0x3   :  { %s21_s22 = sshll.u32 %s197_s21, 4  ;;  %s31_s24 = sshll.u32 %s198_s23, 4  ;;  %s22_s22 = int_to_ptr.vmem [resolvable:$true] %s21_s22  ;;  %s32_s24 = int_to_ptr.vmem [resolvable:$true] %s31_s24 }
   0x4   :  { %s125_s27 = scalar_lea.hbm %s283_s0, 128 }
   0x5   :  { %p126_p0 = scmp.ne.s32.totalorder %s283_s0, %s125_s27  ;;  %p129_p1 = scmp.lt.u32.totalorder %s125_s27, %s283_s0 }
   0x7   :  { %p131_p2 = pnand %p129_p1, %p126_p0 }
   0x9   :  { %134 = shalt.err (!%p131_p2)
}
   0xa   :  { %s135_s8 = scalar_lea.vmem %s22_s22, 128  ;;  %p140_p4 = scmp.lt.s32.totalorder %s22_s22, %s22_s22 }
   0xb   :  { %p136_p3 = scmp.ne.s32.totalorder %s22_s22, %s135_s8  ;;  %p141_p5 = scmp.lt.s32.totalorder %s135_s8, %s135_s8 }
   0xd   :  { %p142_p6 = por %p141_p5, %p140_p4 }
   0xf   :  { %p143_p7 = pnand %p142_p6, %p136_p3 }
  0x11   :  { %146 = shalt.err (!%p143_p7)
}
  0x12   :  { %24 = dma.hbm_to_vmem [thread:$0]  %s283_s0, 128, %s22_s22, [#allocation4]  }
  0x13   :  { %s147_s13 = scalar_lea.hbm %s284_s1, 128 }
  0x14   :  { %p148_p8 = scmp.ne.s32.totalorder %s284_s1, %s147_s13  ;;  %p151_p9 = scmp.lt.u32.totalorder %s147_s13, %s284_s1 }
  0x16   :  { %p153_p10 = pnand %p151_p9, %p148_p8 }
  0x18   :  { %156 = shalt.err (!%p153_p10)
}
  0x19   :  { %s157_s18 = scalar_lea.vmem %s32_s24, 128  ;;  %p162_p12 = scmp.lt.s32.totalorder %s32_s24, %s32_s24 }
  0x1a   :  { %p158_p11 = scmp.ne.s32.totalorder %s32_s24, %s157_s18  ;;  %p163_p13 = scmp.lt.s32.totalorder %s157_s18, %s157_s18 }
  0x1c   :  { %p164_p0 = por %p163_p13, %p162_p12 }
  0x1e   :  { %p165_p1 = pnand %p164_p0, %p158_p11 }
  0x20   :  { %168 = shalt.err (!%p165_p1)
}
  0x21   :  { %34 = dma.hbm_to_vmem [thread:$0]  %s284_s1, 128, %s32_s24, [#allocation7]  }
  0x22   :  { %191 = dma.done.wait [#allocation4], 128  }
  0x23   :  { %192 = vsyncadd [#allocation4], 4294967168 }
  0x24   :  { %193 = dma.done.wait [#allocation7], 128  }
  0x25   :  { %194 = vsyncadd [#allocation7], 4294967168  ;;  %v54_v0 = vlaneseq  ;;  %v49_v5 = vld [vmem:[#allocation3] sm:$0xff]  ;;  %v50_v6 = vld [vmem:[#allocation6] sm:$0xff]  ;;  %vm89_vm0 = vcmask 261120   ;;  %v94_v30 = vstv %s288_s5  ;;  %vm104_vm1 = vcmask 57344  }
  0x26   :  { %v52_v7 = vld [vmem:[%s286_s3] sm:$0x7] }
  0x27   :  { %v55_v1 = vshrl.u32 %v54_v0, 7  ;;  %v53_v8 = vld [vmem:[%s287_s4] sm:$0x7]  ;;  %v98_v28 = vand.u32 127, %v54_v0  ;;  %s199_s4 = smov [#allocation8]  }
  0x28   :  { %v51_v9 = vld [vmem:[%s285_s2] sm:$0xff]  ;;  %s112_s25 = sshll.u32 %s199_s4, 4  ;;  %s113_s25 = int_to_ptr.vmem [resolvable:$true] %s112_s25 }
  0x29   :  { %v56_v2 = vsub.s32 0, %v55_v1  ;;  %v67_v3 = vsub.s32 1, %v55_v1  ;;  %v79_v4 = vsub.s32 2, %v55_v1  ;;  %v101_v29 = vsub.s32 %v98_v28, %v55_v1  ;;  %s169_s26 = scalar_lea.vmem %s113_s25, 16  ;;  %s173_s27 = scalar_lea.vmem %s113_s25, 32 }
  0x2a   :  { %p170_p2 = scmp.ne.s32.totalorder %s113_s25, %s169_s26  ;;  %p174_p3 = scmp.lt.s32.totalorder %s113_s25, %s113_s25 }
  0x2b   :  { %v57_v10 = vrot.slane %v52_v7, %v56_v2  ;;  %v62_v11 = vrot.slane %v53_v8, %v56_v2  ;;  %v68_v12 = vrot.slane %v52_v7, %v67_v3  ;;  %v73_v13 = vrot.slane %v53_v8, %v67_v3  ;;  %p175_p4 = scmp.lt.s32.totalorder %s173_s27, %s169_s26 }
  0x2c   :  { %v80_v14 = vrot.slane %v52_v7, %v79_v4  ;;  %v85_v15 = vrot.slane %v53_v8, %v79_v4 }
  0x2d   :  { %v58_v16 = vmul.f32 %v57_v10, %v49_v5  ;;  %v69_v17 = vmul.f32 %v68_v12, %v50_v6  ;;  %p176_p5 = por %p175_p4, %p174_p3 }
  0x2e   :  { %v81_v18 = vmul.f32 %v80_v14, %v51_v9 }
  0x2f   :  { %v63_v19 = vadd.f32 %v62_v11, %v58_v16  ;;  %v74_v20 = vadd.f32 %v73_v13, %v69_v17  ;;  %p177_p6 = pnand %p176_p5, %p170_p2 }
  0x30   :  { %v86_v21 = vadd.f32 %v85_v15, %v81_v18 }
  0x31   :  { %v64_v22 = vmul.f32 %v63_v19, %v49_v5  ;;  %v75_v23 = vmul.f32 %v74_v20, %v50_v6 }
  0x32   :  { %v87_v24 = vmul.f32 %v86_v21, %v51_v9 }
  0x33   :  { %v76_v25 = vadd.f32 %v75_v23, %v64_v22 }
  0x35   :  { %v88_v26 = vadd.f32 %v87_v24, %v76_v25 }
  0x37   :  { %v90_v27 = vsel %vm89_vm0, %v88_v26, 0.0 }
  0x38   :  { %91 = vadd.xlane.f32.xlu0 %v90_v27 }
  0xc5   :  { %v92_v31 = vpop.xlane.xlu0 %91 }
  0xc6   :  { %v95_v32 = vadd.f32 %v94_v30, %v92_v31 }
  0xc8   :  { %v102_v33 = vrot.slane %v95_v32, %v101_v29 }
  0xca   :  { %105 = vst.msk [vmem:[#allocation8] sm:$0x1] %vm104_vm1, %v102_v33 }
  0xcb   :  { %180 = shalt.err (!%p177_p6)
}
  0xcc   :  { %s181_s5 = scalar_lea.hbm %s289_s6, 16 }
  0xcd   :  { %p182_p7 = scmp.ne.s32.totalorder %s289_s6, %s181_s5  ;;  %p185_p8 = scmp.lt.u32.totalorder %s181_s5, %s289_s6 }
  0xcf   :  { %p187_p9 = pnand %p185_p8, %p182_p7 }
  0xd1   :  { %190 = shalt.err (!%p187_p9)
}
  0xd2   :  { %115 = dma.vmem_to_hbm [thread:$0]  %s113_s25, 16, %s289_s6, [#allocation5]  }
  0xd3   :  { %195 = dma.done.wait [#allocation5], 16  }
  0xd4   :  { %196 = vsyncadd [#allocation5], 4294967280 }
  0xd5   :  { %119 = vsyncpa [#allocation4], 1 }
  0xd6   :  { %120 = vsyncpa [#allocation7], 1 }
  0xd7   :  { %121 = vsyncpa [#allocation5], 1 }

</bundles_post_ra>
